<compile_context>
chip_gen: v7x
topology: tpu7x:2x2x1
jax: 0.10.0
libtpu: 0.0.40
codegen_flags: <defaults>
</compile_context>

<pallas_src>
import functools

import jax
import jax.numpy as jnp
from jax import lax
from jax.experimental import pallas as pl
from jax.experimental.pallas import tpu as pltpu

_NEG_SLOPE = 0.01  # PyTorch F.leaky_relu default negative_slope


def _darknet_bottleneck_kernel(x_ref, masks_ref, params_ref, out_ref,
                               *, H, W, Cin, Ch, Cout, NB):
    """NB images per grid step; everything lane-dense on the flattened H*W axis.

    x_ref      : (NB, Cin, P)   input images, P = H*W on the lane axis
    masks_ref  : (8, P)         zero-padding masks for the 8 non-center 3x3 taps (1.0 = valid)
    params_ref : (8, 128)       packed parameter slab (BN scales pre-folded into the weights):
                     [0:Ch,   0:Cin]                  scaled 1x1 weight (Ch x Cin)
                     [0:Ch,   Cin]                    folded BN1 bias
                     [0:Cout, Cin+1 : Cin+1+9*Ch]     scaled 3x3 weight, col = tap*Ch + ch
                     [0:Cout, Cin+1+9*Ch]             folded BN2 bias
    out_ref    : (NB, Cout, P)  output images
    """
    P = H * W

    # ---- unpack the coalesced parameter slab once per grid step (static slices) ----
    params = params_ref[...]
    w1s = params[0:Ch, 0:Cin]                              # (Ch, Cin), BN1 scale folded in
    b1 = params[0:Ch, Cin:Cin + 1]                         # (Ch, 1)
    o2 = Cin + 1
    w2s = params[0:Cout, o2:o2 + 9 * Ch]                   # (Cout, 9*Ch), BN2 scale folded in
    b2 = params[0:Cout, o2 + 9 * Ch:o2 + 9 * Ch + 1]       # (Cout, 1)
    masks = masks_ref[...]                                 # (8, P)

    x_all = x_ref[...].astype(jnp.float32)                 # (NB, Cin, P)
    outs = []
    for b in range(NB):
        x = x_all[b]                                       # (Cin, P)

        # ---- conv1 (1x1): Cin broadcast VPU FMAs; first term initializes the accumulator ----
        h = w1s[:, 0:1] * x[0:1, :]
        for ci in range(1, Cin):
            h = h + w1s[:, ci:ci + 1] * x[ci:ci + 1, :]
        h = h + b1
        h = jnp.maximum(h, _NEG_SLOPE * h)                 # leaky_relu(0.01)

        # ---- conv2 (3x3, pad=1): 9 rolled taps x Ch broadcast VPU FMAs, masks precomputed ----
        y = None
        for dy in (-1, 0, 1):
            for dx in (-1, 0, 1):
                tap = (dy + 1) * 3 + (dx + 1)
                delta = dy * W + dx                        # flat offset of this tap
                if delta == 0:
                    shifted = h
                else:
                    mrow = tap if tap < 4 else tap - 1     # center tap has no mask row
                    shifted = pltpu.roll(h, (-delta) % P, axis=1)
                    shifted = shifted * masks[mrow:mrow + 1, :]
                for ch in range(Ch):
                    c = tap * Ch + ch
                    term = w2s[:, c:c + 1] * shifted[ch:ch + 1, :]
                    y = term if y is None else y + term
        y = y + b2
        y = jnp.maximum(y, _NEG_SLOPE * y)                 # leaky_relu(0.01)

        outs.append(y + x)                                 # residual add (Cin == Cout)

    out_ref[...] = jnp.stack(outs, axis=0).astype(out_ref.dtype)


def _fold_bn(gamma, beta, mean, var, eps=1e-5):
    scale = gamma / jnp.sqrt(var + eps)
    bias = beta - mean * scale
    return scale, bias


def _build_masks(H, W):
    """(8, H*W) float masks for the 8 non-center 3x3 taps, order: dy outer, dx inner."""
    P = H * W
    r = jnp.arange(P, dtype=jnp.int32) // W
    c = jnp.arange(P, dtype=jnp.int32) % W
    rows = []
    for dy in (-1, 0, 1):
        for dx in (-1, 0, 1):
            if dy == 0 and dx == 0:
                continue
            valid = jnp.ones((P,), jnp.bool_)
            if dy == -1:
                valid = valid & (r >= 1)
            if dy == 1:
                valid = valid & (r < H - 1)
            if dx == -1:
                valid = valid & (c >= 1)
            if dx == 1:
                valid = valid & (c < W - 1)
            rows.append(valid.astype(jnp.float32))
    return jnp.stack(rows, axis=0)


def _build_param_slab(w1_hwio, s1, b1, w2_hwio, s2, b2):
    """Fold BN scales into the conv weights and pack everything into one (8,128) slab."""
    Cin, Ch = w1_hwio.shape[2], w1_hwio.shape[3]
    Cout = w2_hwio.shape[3]
    w1s = w1_hwio.reshape(Cin, Ch).T * s1[:, None]          # (Ch, Cin)
    w2s = w2_hwio.reshape(9 * Ch, Cout).T * s2[:, None]     # (Cout, 9*Ch), col = tap*Ch + ch
    ncols = Cin + 1 + 9 * Ch + 1
    pcols = 128 * max(1, -(-ncols // 128))
    prows = 8 * max(1, -(-max(Ch, Cout) // 8))
    slab = jnp.zeros((prows, pcols), jnp.float32)
    slab = slab.at[0:Ch, 0:Cin].set(w1s)
    slab = slab.at[0:Ch, Cin].set(b1)
    slab = slab.at[0:Cout, Cin + 1:Cin + 1 + 9 * Ch].set(w2s)
    slab = slab.at[0:Cout, Cin + 1 + 9 * Ch].set(b2)
    return slab


def _choose_batch_block(N, Cin, Cout, P, vmem_budget_bytes=8 << 20):
    """Largest NB that divides N, keeps >= 2 grid steps for v7x megacore when N >= 2, and keeps
    the double-buffered per-step working set well under the scoped-VMEM budget."""
    if N <= 1:
        return 1
    per_image = (Cin + Cout) * P * 4 * 2                    # in + out blocks, double buffered
    cap = max(1, vmem_budget_bytes // per_image)
    best = 1
    for nb in range(1, N + 1):
        if N % nb:
            continue
        if nb > cap or N // nb < 2:
            break
        best = nb
    return best


@jax.jit
def darknet_bottleneck(x_nchw, w1_hwio, gamma1, beta1, mean1, var1,
                       w2_hwio, gamma2, beta2, mean2, var2):
    """DarknetBottleneck forward (eval-mode BN).  NCHW in / NCHW out, only free reshapes."""
    N, Cin, H, W = x_nchw.shape
    Ch = w1_hwio.shape[3]
    Cout = w2_hwio.shape[3]
    assert Cin == Cout, "add_identity requires in_channels == out_channels"
    P = H * W

    s1, b1 = _fold_bn(gamma1, beta1, mean1, var1)
    s2, b2 = _fold_bn(gamma2, beta2, mean2, var2)
    slab = _build_param_slab(w1_hwio, s1, b1, w2_hwio, s2, b2)
    masks = _build_masks(H, W)

    x_flat = x_nchw.reshape(N, Cin, P)                      # free reshape: lane axis = H*W
    NB = _choose_batch_block(N, Cin, Cout, P)
    grid = (N // NB,)

    kernel = functools.partial(_darknet_bottleneck_kernel,
                               H=H, W=W, Cin=Cin, Ch=Ch, Cout=Cout, NB=NB)
    out_flat = pl.pallas_call(
        kernel,
        out_shape=jax.ShapeDtypeStruct((N, Cout, P), jnp.float32),
        grid=grid,
        in_specs=[
            pl.BlockSpec((NB, Cin, P), lambda n: (n, 0, 0)),
            pl.BlockSpec(masks.shape, lambda n: (0, 0)),    # constant block: fetched once
            pl.BlockSpec(slab.shape, lambda n: (0, 0)),     # constant block: fetched once
        ],
        out_specs=pl.BlockSpec((NB, Cout, P), lambda n: (n, 0, 0)),
        compiler_params=pltpu.CompilerParams(
            dimension_semantics=("parallel",)),             # >=2 steps -> both TCs on v7x
    )(x_flat, masks, slab)

    return out_flat.reshape(N, Cout, H, W)                  # free reshape back to NCHW


def _reference(x_nchw, w1_hwio, s1, b1, w2_hwio, s2, b2):
    """Pure-JAX reference (lax conv) for correctness checking."""
    x = jnp.transpose(x_nchw, (0, 2, 3, 1))
    dn = ('NHWC', 'HWIO', 'NHWC')
    h = lax.conv_general_dilated(x, w1_hwio, (1, 1), [(0, 0), (0, 0)],
                                 dimension_numbers=dn)
    h = h * s1.reshape(1, 1, 1, -1) + b1.reshape(1, 1, 1, -1)
    h = jnp.where(h > 0, h, _NEG_SLOPE * h)
    y = lax.conv_general_dilated(h, w2_hwio, (1, 1), [(1, 1), (1, 1)],
                                 dimension_numbers=dn)
    y = y * s2.reshape(1, 1, 1, -1) + b2.reshape(1, 1, 1, -1)
    y = jnp.where(y > 0, y, _NEG_SLOPE * y)
    out = y + x
    return jnp.transpose(out, (0, 3, 1, 2))


if __name__ == "__main__":
    # DarknetBottleneck(in_channels=4, out_channels=4, kernel_size=3,
    #                   expansion=0.5, add_identity=True, use_depthwise=False,
    #                   act='leaky_relu'), eval-mode BatchNorm.
    N, Cin, H, W = 2, 4, 16, 16
    Cout = 4
    Ch = int(Cout * 0.5)          # hidden_channels = 2

    key = jax.random.PRNGKey(0)
    ks = jax.random.split(key, 12)

    x = jax.random.normal(ks[0], (N, Cin, H, W), jnp.float32)

    w1_hwio = 0.3 * jax.random.normal(ks[1], (1, 1, Cin, Ch), jnp.float32)   # conv1 1x1
    w2_hwio = 0.3 * jax.random.normal(ks[2], (3, 3, Ch, Cout), jnp.float32)  # conv2 3x3

    gamma1 = 1.0 + 0.1 * jax.random.normal(ks[3], (Ch,), jnp.float32)
    beta1 = 0.1 * jax.random.normal(ks[4], (Ch,), jnp.float32)
    mean1 = 0.1 * jax.random.normal(ks[5], (Ch,), jnp.float32)
    var1 = 0.5 + jnp.abs(jax.random.normal(ks[6], (Ch,), jnp.float32))

    gamma2 = 1.0 + 0.1 * jax.random.normal(ks[7], (Cout,), jnp.float32)
    beta2 = 0.1 * jax.random.normal(ks[8], (Cout,), jnp.float32)
    mean2 = 0.1 * jax.random.normal(ks[9], (Cout,), jnp.float32)
    var2 = 0.5 + jnp.abs(jax.random.normal(ks[10], (Cout,), jnp.float32))

    out = darknet_bottleneck(x, w1_hwio, gamma1, beta1, mean1, var1,
                             w2_hwio, gamma2, beta2, mean2, var2)
    out = jax.block_until_ready(out)

    s1, b1 = _fold_bn(gamma1, beta1, mean1, var1)
    s2, b2 = _fold_bn(gamma2, beta2, mean2, var2)
    ref = _reference(x, w1_hwio, s1, b1, w2_hwio, s2, b2)
    assert out.shape == (N, Cout, H, W)
    err = float(jnp.max(jnp.abs(out - ref)))
    assert jnp.allclose(out, ref, rtol=1e-5, atol=1e-5), err

    print("KERNEL_OK")
</pallas_src>

<mosaic_0001>
module attributes {stable_mosaic.version = 11 : i64} {
  func.func @_darknet_bottleneck_kernel(%arg0: i32, %arg1: memref<1x4x256xf32, #tpu.memory_space<vmem>>, %arg2: memref<8x256xf32, #tpu.memory_space<vmem>>, %arg3: memref<8x128xf32, #tpu.memory_space<vmem>>, %arg4: memref<1x4x256xf32, #tpu.memory_space<vmem>>) attributes {dimension_semantics = [#tpu.dimension_semantics<parallel>], iteration_bounds = array<i64: 2>, scalar_prefetch = 0 : i64, scratch_operands = 0 : i64, tpu.core_type = #tpu.core_type<tc>, window_params = [{transform_indices = @transform_0, window_bounds = array<i64: 1, 4, 256>}, {pipeline_mode = #tpu.pipeline_mode<synchronous>, transform_indices = @transform_1, window_bounds = array<i64: 8, 256>}, {pipeline_mode = #tpu.pipeline_mode<synchronous>, transform_indices = @transform_2, window_bounds = array<i64: 8, 128>}, {transform_indices = @transform_3, window_bounds = array<i64: 1, 4, 256>}]} {
    %c0 = arith.constant 0 : index
    %c0_0 = arith.constant 0 : index
    %0 = vector.load %arg3[%c0, %c0_0] : memref<8x128xf32, #tpu.memory_space<vmem>>, vector<8x128xf32>
    %1 = vector.extract_strided_slice %0 {offsets = [0, 0], sizes = [2, 4], strides = [1, 1]} : vector<8x128xf32> to vector<2x4xf32>
    %2 = vector.extract_strided_slice %0 {offsets = [0, 4], sizes = [2, 1], strides = [1, 1]} : vector<8x128xf32> to vector<2x1xf32>
    %3 = vector.extract_strided_slice %0 {offsets = [0, 5], sizes = [4, 18], strides = [1, 1]} : vector<8x128xf32> to vector<4x18xf32>
    %4 = vector.extract_strided_slice %0 {offsets = [0, 23], sizes = [4, 1], strides = [1, 1]} : vector<8x128xf32> to vector<4x1xf32>
    %c0_1 = arith.constant 0 : index
    %c0_2 = arith.constant 0 : index
    %5 = vector.load %arg2[%c0_1, %c0_2] : memref<8x256xf32, #tpu.memory_space<vmem>>, vector<8x256xf32>
    %c0_3 = arith.constant 0 : index
    %c0_4 = arith.constant 0 : index
    %c0_5 = arith.constant 0 : index
    %6 = vector.load %arg1[%c0_3, %c0_4, %c0_5] : memref<1x4x256xf32, #tpu.memory_space<vmem>>, vector<1x4x256xf32>
    %7 = vector.shape_cast %6 : vector<1x4x256xf32> to vector<4x256xf32>
    %8 = vector.extract_strided_slice %1 {offsets = [0, 0], sizes = [2, 1], strides = [1, 1]} : vector<2x4xf32> to vector<2x1xf32>
    %9 = vector.extract_strided_slice %7 {offsets = [0, 0], sizes = [1, 256], strides = [1, 1]} : vector<4x256xf32> to vector<1x256xf32>
    %10 = vector.broadcast %8 : vector<2x1xf32> to vector<2x256xf32>
    %11 = vector.broadcast %9 : vector<1x256xf32> to vector<2x256xf32>
    %12 = arith.mulf %10, %11 : vector<2x256xf32>
    %13 = vector.extract_strided_slice %1 {offsets = [0, 1], sizes = [2, 1], strides = [1, 1]} : vector<2x4xf32> to vector<2x1xf32>
    %14 = vector.extract_strided_slice %7 {offsets = [1, 0], sizes = [1, 256], strides = [1, 1]} : vector<4x256xf32> to vector<1x256xf32>
    %15 = vector.broadcast %13 : vector<2x1xf32> to vector<2x256xf32>
    %16 = vector.broadcast %14 : vector<1x256xf32> to vector<2x256xf32>
    %17 = arith.mulf %15, %16 : vector<2x256xf32>
    %18 = arith.addf %12, %17 : vector<2x256xf32>
    %19 = vector.extract_strided_slice %1 {offsets = [0, 2], sizes = [2, 1], strides = [1, 1]} : vector<2x4xf32> to vector<2x1xf32>
    %20 = vector.extract_strided_slice %7 {offsets = [2, 0], sizes = [1, 256], strides = [1, 1]} : vector<4x256xf32> to vector<1x256xf32>
    %21 = vector.broadcast %19 : vector<2x1xf32> to vector<2x256xf32>
    %22 = vector.broadcast %20 : vector<1x256xf32> to vector<2x256xf32>
    %23 = arith.mulf %21, %22 : vector<2x256xf32>
    %24 = arith.addf %18, %23 : vector<2x256xf32>
    %25 = vector.extract_strided_slice %1 {offsets = [0, 3], sizes = [2, 1], strides = [1, 1]} : vector<2x4xf32> to vector<2x1xf32>
    %26 = vector.extract_strided_slice %7 {offsets = [3, 0], sizes = [1, 256], strides = [1, 1]} : vector<4x256xf32> to vector<1x256xf32>
    %27 = vector.broadcast %25 : vector<2x1xf32> to vector<2x256xf32>
    %28 = vector.broadcast %26 : vector<1x256xf32> to vector<2x256xf32>
    %29 = arith.mulf %27, %28 : vector<2x256xf32>
    %30 = arith.addf %24, %29 : vector<2x256xf32>
    %31 = vector.broadcast %2 : vector<2x1xf32> to vector<2x256xf32>
    %32 = arith.addf %30, %31 : vector<2x256xf32>
    %cst = arith.constant 0.00999999977 : f32
    %33 = vector.broadcast %cst : f32 to vector<2x256xf32>
    %34 = arith.mulf %33, %32 : vector<2x256xf32>
    %35 = arith.maximumf %32, %34 : vector<2x256xf32>
    %c17_i32 = arith.constant 17 : i32
    %36 = tpu.dynamic_rotate %35 by %c17_i32 dim 1 : vector<2x256xf32>, i32 -> vector<2x256xf32>
    %37 = vector.extract_strided_slice %5 {offsets = [0, 0], sizes = [1, 256], strides = [1, 1]} : vector<8x256xf32> to vector<1x256xf32>
    %38 = vector.broadcast %37 : vector<1x256xf32> to vector<2x256xf32>
    %39 = arith.mulf %36, %38 : vector<2x256xf32>
    %40 = vector.extract_strided_slice %3 {offsets = [0, 0], sizes = [4, 1], strides = [1, 1]} : vector<4x18xf32> to vector<4x1xf32>
    %41 = vector.extract_strided_slice %39 {offsets = [0, 0], sizes = [1, 256], strides = [1, 1]} : vector<2x256xf32> to vector<1x256xf32>
    %42 = vector.broadcast %40 : vector<4x1xf32> to vector<4x256xf32>
    %43 = vector.broadcast %41 : vector<1x256xf32> to vector<4x256xf32>
    %44 = arith.mulf %42, %43 : vector<4x256xf32>
    %45 = vector.extract_strided_slice %3 {offsets = [0, 1], sizes = [4, 1], strides = [1, 1]} : vector<4x18xf32> to vector<4x1xf32>
    %46 = vector.extract_strided_slice %39 {offsets = [1, 0], sizes = [1, 256], strides = [1, 1]} : vector<2x256xf32> to vector<1x256xf32>
    %47 = vector.broadcast %45 : vector<4x1xf32> to vector<4x256xf32>
    %48 = vector.broadcast %46 : vector<1x256xf32> to vector<4x256xf32>
    %49 = arith.mulf %47, %48 : vector<4x256xf32>
    %50 = arith.addf %44, %49 : vector<4x256xf32>
    %c16_i32 = arith.constant 16 : i32
    %51 = tpu.dynamic_rotate %35 by %c16_i32 dim 1 : vector<2x256xf32>, i32 -> vector<2x256xf32>
    %52 = vector.extract_strided_slice %5 {offsets = [1, 0], sizes = [1, 256], strides = [1, 1]} : vector<8x256xf32> to vector<1x256xf32>
    %53 = vector.broadcast %52 : vector<1x256xf32> to vector<2x256xf32>
    %54 = arith.mulf %51, %53 : vector<2x256xf32>
    %55 = vector.extract_strided_slice %3 {offsets = [0, 2], sizes = [4, 1], strides = [1, 1]} : vector<4x18xf32> to vector<4x1xf32>
    %56 = vector.extract_strided_slice %54 {offsets = [0, 0], sizes = [1, 256], strides = [1, 1]} : vector<2x256xf32> to vector<1x256xf32>
    %57 = vector.broadcast %55 : vector<4x1xf32> to vector<4x256xf32>
    %58 = vector.broadcast %56 : vector<1x256xf32> to vector<4x256xf32>
    %59 = arith.mulf %57, %58 : vector<4x256xf32>
    %60 = arith.addf %50, %59 : vector<4x256xf32>
    %61 = vector.extract_strided_slice %3 {offsets = [0, 3], sizes = [4, 1], strides = [1, 1]} : vector<4x18xf32> to vector<4x1xf32>
    %62 = vector.extract_strided_slice %54 {offsets = [1, 0], sizes = [1, 256], strides = [1, 1]} : vector<2x256xf32> to vector<1x256xf32>
    %63 = vector.broadcast %61 : vector<4x1xf32> to vector<4x256xf32>
    %64 = vector.broadcast %62 : vector<1x256xf32> to vector<4x256xf32>
    %65 = arith.mulf %63, %64 : vector<4x256xf32>
    %66 = arith.addf %60, %65 : vector<4x256xf32>
    %c15_i32 = arith.constant 15 : i32
    %67 = tpu.dynamic_rotate %35 by %c15_i32 dim 1 : vector<2x256xf32>, i32 -> vector<2x256xf32>
    %68 = vector.extract_strided_slice %5 {offsets = [2, 0], sizes = [1, 256], strides = [1, 1]} : vector<8x256xf32> to vector<1x256xf32>
    %69 = vector.broadcast %68 : vector<1x256xf32> to vector<2x256xf32>
    %70 = arith.mulf %67, %69 : vector<2x256xf32>
    %71 = vector.extract_strided_slice %3 {offsets = [0, 4], sizes = [4, 1], strides = [1, 1]} : vector<4x18xf32> to vector<4x1xf32>
    %72 = vector.extract_strided_slice %70 {offsets = [0, 0], sizes = [1, 256], strides = [1, 1]} : vector<2x256xf32> to vector<1x256xf32>
    %73 = vector.broadcast %71 : vector<4x1xf32> to vector<4x256xf32>
    %74 = vector.broadcast %72 : vector<1x256xf32> to vector<4x256xf32>
    %75 = arith.mulf %73, %74 : vector<4x256xf32>
    %76 = arith.addf %66, %75 : vector<4x256xf32>
    %77 = vector.extract_strided_slice %3 {offsets = [0, 5], sizes = [4, 1], strides = [1, 1]} : vector<4x18xf32> to vector<4x1xf32>
    %78 = vector.extract_strided_slice %70 {offsets = [1, 0], sizes = [1, 256], strides = [1, 1]} : vector<2x256xf32> to vector<1x256xf32>
    %79 = vector.broadcast %77 : vector<4x1xf32> to vector<4x256xf32>
    %80 = vector.broadcast %78 : vector<1x256xf32> to vector<4x256xf32>
    %81 = arith.mulf %79, %80 : vector<4x256xf32>
    %82 = arith.addf %76, %81 : vector<4x256xf32>
    %c1_i32 = arith.constant 1 : i32
    %83 = tpu.dynamic_rotate %35 by %c1_i32 dim 1 : vector<2x256xf32>, i32 -> vector<2x256xf32>
    %84 = vector.extract_strided_slice %5 {offsets = [3, 0], sizes = [1, 256], strides = [1, 1]} : vector<8x256xf32> to vector<1x256xf32>
    %85 = vector.broadcast %84 : vector<1x256xf32> to vector<2x256xf32>
    %86 = arith.mulf %83, %85 : vector<2x256xf32>
    %87 = vector.extract_strided_slice %3 {offsets = [0, 6], sizes = [4, 1], strides = [1, 1]} : vector<4x18xf32> to vector<4x1xf32>
    %88 = vector.extract_strided_slice %86 {offsets = [0, 0], sizes = [1, 256], strides = [1, 1]} : vector<2x256xf32> to vector<1x256xf32>
    %89 = vector.broadcast %87 : vector<4x1xf32> to vector<4x256xf32>
    %90 = vector.broadcast %88 : vector<1x256xf32> to vector<4x256xf32>
    %91 = arith.mulf %89, %90 : vector<4x256xf32>
    %92 = arith.addf %82, %91 : vector<4x256xf32>
    %93 = vector.extract_strided_slice %3 {offsets = [0, 7], sizes = [4, 1], strides = [1, 1]} : vector<4x18xf32> to vector<4x1xf32>
    %94 = vector.extract_strided_slice %86 {offsets = [1, 0], sizes = [1, 256], strides = [1, 1]} : vector<2x256xf32> to vector<1x256xf32>
    %95 = vector.broadcast %93 : vector<4x1xf32> to vector<4x256xf32>
    %96 = vector.broadcast %94 : vector<1x256xf32> to vector<4x256xf32>
    %97 = arith.mulf %95, %96 : vector<4x256xf32>
    %98 = arith.addf %92, %97 : vector<4x256xf32>
    %99 = vector.extract_strided_slice %3 {offsets = [0, 8], sizes = [4, 1], strides = [1, 1]} : vector<4x18xf32> to vector<4x1xf32>
    %100 = vector.extract_strided_slice %35 {offsets = [0, 0], sizes = [1, 256], strides = [1, 1]} : vector<2x256xf32> to vector<1x256xf32>
    %101 = vector.broadcast %99 : vector<4x1xf32> to vector<4x256xf32>
    %102 = vector.broadcast %100 : vector<1x256xf32> to vector<4x256xf32>
    %103 = arith.mulf %101, %102 : vector<4x256xf32>
    %104 = arith.addf %98, %103 : vector<4x256xf32>
    %105 = vector.extract_strided_slice %3 {offsets = [0, 9], sizes = [4, 1], strides = [1, 1]} : vector<4x18xf32> to vector<4x1xf32>
    %106 = vector.extract_strided_slice %35 {offsets = [1, 0], sizes = [1, 256], strides = [1, 1]} : vector<2x256xf32> to vector<1x256xf32>
    %107 = vector.broadcast %105 : vector<4x1xf32> to vector<4x256xf32>
    %108 = vector.broadcast %106 : vector<1x256xf32> to vector<4x256xf32>
    %109 = arith.mulf %107, %108 : vector<4x256xf32>
    %110 = arith.addf %104, %109 : vector<4x256xf32>
    %c255_i32 = arith.constant 255 : i32
    %111 = tpu.dynamic_rotate %35 by %c255_i32 dim 1 : vector<2x256xf32>, i32 -> vector<2x256xf32>
    %112 = vector.extract_strided_slice %5 {offsets = [4, 0], sizes = [1, 256], strides = [1, 1]} : vector<8x256xf32> to vector<1x256xf32>
    %113 = vector.broadcast %112 : vector<1x256xf32> to vector<2x256xf32>
    %114 = arith.mulf %111, %113 : vector<2x256xf32>
    %115 = vector.extract_strided_slice %3 {offsets = [0, 10], sizes = [4, 1], strides = [1, 1]} : vector<4x18xf32> to vector<4x1xf32>
    %116 = vector.extract_strided_slice %114 {offsets = [0, 0], sizes = [1, 256], strides = [1, 1]} : vector<2x256xf32> to vector<1x256xf32>
    %117 = vector.broadcast %115 : vector<4x1xf32> to vector<4x256xf32>
    %118 = vector.broadcast %116 : vector<1x256xf32> to vector<4x256xf32>
    %119 = arith.mulf %117, %118 : vector<4x256xf32>
    %120 = arith.addf %110, %119 : vector<4x256xf32>
    %121 = vector.extract_strided_slice %3 {offsets = [0, 11], sizes = [4, 1], strides = [1, 1]} : vector<4x18xf32> to vector<4x1xf32>
    %122 = vector.extract_strided_slice %114 {offsets = [1, 0], sizes = [1, 256], strides = [1, 1]} : vector<2x256xf32> to vector<1x256xf32>
    %123 = vector.broadcast %121 : vector<4x1xf32> to vector<4x256xf32>
    %124 = vector.broadcast %122 : vector<1x256xf32> to vector<4x256xf32>
    %125 = arith.mulf %123, %124 : vector<4x256xf32>
    %126 = arith.addf %120, %125 : vector<4x256xf32>
    %c241_i32 = arith.constant 241 : i32
    %127 = tpu.dynamic_rotate %35 by %c241_i32 dim 1 : vector<2x256xf32>, i32 -> vector<2x256xf32>
    %128 = vector.extract_strided_slice %5 {offsets = [5, 0], sizes = [1, 256], strides = [1, 1]} : vector<8x256xf32> to vector<1x256xf32>
    %129 = vector.broadcast %128 : vector<1x256xf32> to vector<2x256xf32>
    %130 = arith.mulf %127, %129 : vector<2x256xf32>
    %131 = vector.extract_strided_slice %3 {offsets = [0, 12], sizes = [4, 1], strides = [1, 1]} : vector<4x18xf32> to vector<4x1xf32>
    %132 = vector.extract_strided_slice %130 {offsets = [0, 0], sizes = [1, 256], strides = [1, 1]} : vector<2x256xf32> to vector<1x256xf32>
    %133 = vector.broadcast %131 : vector<4x1xf32> to vector<4x256xf32>
    %134 = vector.broadcast %132 : vector<1x256xf32> to vector<4x256xf32>
    %135 = arith.mulf %133, %134 : vector<4x256xf32>
    %136 = arith.addf %126, %135 : vector<4x256xf32>
    %137 = vector.extract_strided_slice %3 {offsets = [0, 13], sizes = [4, 1], strides = [1, 1]} : vector<4x18xf32> to vector<4x1xf32>
    %138 = vector.extract_strided_slice %130 {offsets = [1, 0], sizes = [1, 256], strides = [1, 1]} : vector<2x256xf32> to vector<1x256xf32>
    %139 = vector.broadcast %137 : vector<4x1xf32> to vector<4x256xf32>
    %140 = vector.broadcast %138 : vector<1x256xf32> to vector<4x256xf32>
    %141 = arith.mulf %139, %140 : vector<4x256xf32>
    %142 = arith.addf %136, %141 : vector<4x256xf32>
    %c240_i32 = arith.constant 240 : i32
    %143 = tpu.dynamic_rotate %35 by %c240_i32 dim 1 : vector<2x256xf32>, i32 -> vector<2x256xf32>
    %144 = vector.extract_strided_slice %5 {offsets = [6, 0], sizes = [1, 256], strides = [1, 1]} : vector<8x256xf32> to vector<1x256xf32>
    %145 = vector.broadcast %144 : vector<1x256xf32> to vector<2x256xf32>
    %146 = arith.mulf %143, %145 : vector<2x256xf32>
    %147 = vector.extract_strided_slice %3 {offsets = [0, 14], sizes = [4, 1], strides = [1, 1]} : vector<4x18xf32> to vector<4x1xf32>
    %148 = vector.extract_strided_slice %146 {offsets = [0, 0], sizes = [1, 256], strides = [1, 1]} : vector<2x256xf32> to vector<1x256xf32>
    %149 = vector.broadcast %147 : vector<4x1xf32> to vector<4x256xf32>
    %150 = vector.broadcast %148 : vector<1x256xf32> to vector<4x256xf32>
    %151 = arith.mulf %149, %150 : vector<4x256xf32>
    %152 = arith.addf %142, %151 : vector<4x256xf32>
    %153 = vector.extract_strided_slice %3 {offsets = [0, 15], sizes = [4, 1], strides = [1, 1]} : vector<4x18xf32> to vector<4x1xf32>
    %154 = vector.extract_strided_slice %146 {offsets = [1, 0], sizes = [1, 256], strides = [1, 1]} : vector<2x256xf32> to vector<1x256xf32>
    %155 = vector.broadcast %153 : vector<4x1xf32> to vector<4x256xf32>
    %156 = vector.broadcast %154 : vector<1x256xf32> to vector<4x256xf32>
    %157 = arith.mulf %155, %156 : vector<4x256xf32>
    %158 = arith.addf %152, %157 : vector<4x256xf32>
    %c239_i32 = arith.constant 239 : i32
    %159 = tpu.dynamic_rotate %35 by %c239_i32 dim 1 : vector<2x256xf32>, i32 -> vector<2x256xf32>
    %160 = vector.extract_strided_slice %5 {offsets = [7, 0], sizes = [1, 256], strides = [1, 1]} : vector<8x256xf32> to vector<1x256xf32>
    %161 = vector.broadcast %160 : vector<1x256xf32> to vector<2x256xf32>
    %162 = arith.mulf %159, %161 : vector<2x256xf32>
    %163 = vector.extract_strided_slice %3 {offsets = [0, 16], sizes = [4, 1], strides = [1, 1]} : vector<4x18xf32> to vector<4x1xf32>
    %164 = vector.extract_strided_slice %162 {offsets = [0, 0], sizes = [1, 256], strides = [1, 1]} : vector<2x256xf32> to vector<1x256xf32>
    %165 = vector.broadcast %163 : vector<4x1xf32> to vector<4x256xf32>
    %166 = vector.broadcast %164 : vector<1x256xf32> to vector<4x256xf32>
    %167 = arith.mulf %165, %166 : vector<4x256xf32>
    %168 = arith.addf %158, %167 : vector<4x256xf32>
    %169 = vector.extract_strided_slice %3 {offsets = [0, 17], sizes = [4, 1], strides = [1, 1]} : vector<4x18xf32> to vector<4x1xf32>
    %170 = vector.extract_strided_slice %162 {offsets = [1, 0], sizes = [1, 256], strides = [1, 1]} : vector<2x256xf32> to vector<1x256xf32>
    %171 = vector.broadcast %169 : vector<4x1xf32> to vector<4x256xf32>
    %172 = vector.broadcast %170 : vector<1x256xf32> to vector<4x256xf32>
    %173 = arith.mulf %171, %172 : vector<4x256xf32>
    %174 = arith.addf %168, %173 : vector<4x256xf32>
    %175 = vector.broadcast %4 : vector<4x1xf32> to vector<4x256xf32>
    %176 = arith.addf %174, %175 : vector<4x256xf32>
    %cst_6 = arith.constant 0.00999999977 : f32
    %177 = vector.broadcast %cst_6 : f32 to vector<4x256xf32>
    %178 = arith.mulf %177, %176 : vector<4x256xf32>
    %179 = arith.maximumf %176, %178 : vector<4x256xf32>
    %180 = arith.addf %179, %7 : vector<4x256xf32>
    %181 = vector.shape_cast %180 : vector<4x256xf32> to vector<1x4x256xf32>
    %c0_7 = arith.constant 0 : index
    %c0_8 = arith.constant 0 : index
    %c0_9 = arith.constant 0 : index
    %182 = vector.load %arg4[%c0_7, %c0_8, %c0_9] : memref<1x4x256xf32, #tpu.memory_space<vmem>>, vector<1x4x256xf32>
    tpu.vector_store %arg4[%c0_7, %c0_8, %c0_9], %181 {strides = array<i32>} : memref<1x4x256xf32, #tpu.memory_space<vmem>>, vector<1x4x256xf32>,
    return
  }
  func.func @transform_0(%arg0: i32) -> (i32, i32, i32) {
    %c0_i32 = arith.constant 0 : i32
    %c0_i32_0 = arith.constant 0 : i32
    %c0_i32_1 = arith.constant 0 : i32
    return %arg0, %c0_i32, %c0_i32_0 : i32, i32, i32
  }
  func.func @transform_1(%arg0: i32) -> (i32, i32) {
    %c0_i32 = arith.constant 0 : i32
    %c0_i32_0 = arith.constant 0 : i32
    %c0_i32_1 = arith.constant 0 : i32
    return %c0_i32, %c0_i32_0 : i32, i32
  }
  func.func @transform_2(%arg0: i32) -> (i32, i32) {
    %c0_i32 = arith.constant 0 : i32
    %c0_i32_0 = arith.constant 0 : i32
    %c0_i32_1 = arith.constant 0 : i32
    return %c0_i32, %c0_i32_0 : i32, i32
  }
  func.func @transform_3(%arg0: i32) -> (i32, i32, i32) {
    %c0_i32 = arith.constant 0 : i32
    %c0_i32_0 = arith.constant 0 : i32
    %c0_i32_1 = arith.constant 0 : i32
    return %arg0, %c0_i32, %c0_i32_0 : i32, i32, i32
  }
}

</mosaic_0001>

<bundles_post_ra>
// kernel: darknet_bottleneck.1
= control target key start
LH: loop header
LB: loop body
LE: loop exit
PB: predicated region body
PF: predicated region fallthrough
CT: control target
= control target key end

     0   :  { %s925_s12 = smov 0   ;;  %s1193_s0 = inlined_call_operand.vmem [shape: f32[2,4,256], index: 0, kind: input, shape index: {}]   ;;  %s1194_s1 = inlined_call_operand.vmem [shape: f32[8,256], index: 1, kind: input, shape index: {}]   ;;  %s1195_s2 = inlined_call_operand.vmem [shape: f32[8,128], index: 2, kind: input, shape index: {}]   ;;  %s1196_s3 = inlined_call_operand.vmem [shape: f32[2,4,256], index: 3, kind: output, shape index: {}]  }
   0x1 LB: > { %s787_s13 = sadd.s32 4294967295, %s871_s12   ;;  %p791_p0 = scmp.ge.s32.totalorder %s871_s12, 1  ;;  %s871_s12 = sphi %s925_s12, %s13_s12  }
   0x2   : > { %p137_p1 = scmp.lt.s32.totalorder %s871_s12, 3 }
   0x4   : > { %p138_p2 = pnand %p791_p0, %p137_p1 }
   0x5   : > { %v936_v0 = vld [vmem:[%s1195_s2] sm:$0xff] (!%p138_p2)  ;;  %v873_v1 = vmov (!%p138_p2), 2   ;;  %v874_v2 = vmov (!%p138_p2), 0   ;;  %v875_v3 = vmov (!%p138_p2), 3   ;;  %v876_v4 = vmov (!%p138_p2), 1   ;;  %p161_p3 = scmp.lt.s32.totalorder (!%p138_p2), %s787_s13, 1 }
   0x6   : > { %141 = sbr.rel (%p138_p2) target bundleno = 348 (0x15c), region = 32  ;;  %842 = vset.pattern.permute.xlu1 (!%p138_p2), %v873_v1  ;;  %840 = vset.pattern.permute.xlu0 (!%p138_p2), %v874_v2  ;;  %v877_v5 = vmov (!%p138_p2), 4   ;;  %v878_v6 = vmov (!%p138_p2), 5   ;;  %v879_v7 = vmov (!%p138_p2), 6   ;;  %v880_v8 = vmov (!%p138_p2), 8   ;;  %s894_s20 = smov (!%p138_p2), 17  }
   0x7   : > { %228 = vperm.xlu1 (!%p138_p2), %842, %v936_v0   ;;  %177 = vperm.xlu0 (!%p138_p2), %840, %v936_v0   ;;  %v881_v9 = vmov (!%p138_p2), 7   ;;  %v882_v10 = vmov (!%p138_p2), 11   ;;  %v883_v11 = vmov (!%p138_p2), 9   ;;  %v884_v12 = vmov (!%p138_p2), 12   ;;  %s895_s21 = smov (!%p138_p2), 16   ;;  %s896_s22 = smov (!%p138_p2), 15  }
   0x8   : > { %v885_v13 = vmov (!%p138_p2), 10   ;;  %v886_v14 = vmov (!%p138_p2), 15   ;;  %v887_v15 = vmov (!%p138_p2), 13   ;;  %v888_v16 = vmov (!%p138_p2), 16   ;;  %s897_s23 = smov (!%p138_p2), 1   ;;  %s898_s24 = smov (!%p138_p2), 113  }
   0x9   : > { %v889_v17 = vmov (!%p138_p2), 14   ;;  %v890_v18 = vmov (!%p138_p2), 19   ;;  %v891_v19 = vmov (!%p138_p2), 17   ;;  %v892_v20 = vmov (!%p138_p2), 18   ;;  %s900_s25 = smov (!%p138_p2), 127   ;;  %s901_s26 = smov (!%p138_p2), 111  }
   0xa   : > { %v893_v21 = vmov (!%p138_p2), 21   ;;  %v181_v22 = vlaneseq (!%p138_p2)  ;;  %s903_s27 = smov (!%p138_p2), 112  }
   0xb   : > { %843 = vset.pattern.permute.xlu1 (!%p138_p2), %v875_v3  ;;  %841 = vset.pattern.permute.xlu0 (!%p138_p2), %v876_v4 }
   0xc   : > { %254 = vperm.xlu1 (!%p138_p2), %843, %v936_v0   ;;  %202 = vperm.xlu0 (!%p138_p2), %841, %v936_v0   ;;  %v182_v23 = vshrl.u32 (!%p138_p2), %v181_v22, 7 }
   0xd   : > { %s1198_s13 = smov (!%p161_p3, %s787_s13), 1 }
   0xe   : > { %s798_s16 = sshll.u32 %s1198_s13, 3  ;;  %v970_v24 = vsub.s32 0, %v182_v23  ;;  %v972_v25 = vsub.s32 4, %v182_v23  ;;  %v974_v26 = vsub.s32 1, %v182_v23  ;;  %v976_v27 = vsub.s32 5, %v182_v23 }
   0xf   : > { %s165_s19 = scalar_lea.vmem %s1193_s0, %s798_s16  ;;  %v980_v29 = vsub.s32 2, %v182_v23  ;;  %v982_v30 = vsub.s32 6, %v182_v23  ;;  %v984_v31 = vsub.s32 3, %v182_v23  ;;  %v986_v32 = vsub.s32 7, %v182_v23  ;;  %s170_s7 = scalar_lea.vmem %s1196_s3, %s798_s16 }
  0x10   : > { %844 = vset.pattern.permute.xlu1 %v877_v5  ;;  %845 = vset.pattern.permute.xlu0 %v878_v6  ;;  %v978_v28 = vld [vmem:[%s165_s19] sm:$0xff] }
  0x11   : > { %280 = vperm.xlu1 %844, %v936_v0   ;;  %309 = vperm.xlu0 %845, %v936_v0   ;;  %v184_v33 = vrot.slane %v978_v28, %v970_v24  ;;  %v188_v34 = vrot.slane %v978_v28, %v972_v25  ;;  %v208_v35 = vrot.slane %v978_v28, %v974_v26 }
  0x12   : > { %v212_v36 = vrot.slane %v978_v28, %v976_v27  ;;  %v234_v37 = vrot.slane %v978_v28, %v980_v29  ;;  %v238_v38 = vrot.slane %v978_v28, %v982_v30  ;;  %v260_v41 = vrot.slane %v978_v28, %v984_v31 }
  0x13   : > { %v264_v42 = vrot.slane %v978_v28, %v986_v32  ;;  %v194_v43 = vrot.slane %v184_v33, %v970_v24  ;;  %v198_v44 = vrot.slane %v188_v34, %v970_v24  ;;  %v218_v45 = vrot.slane %v208_v35, %v974_v26 }
  0x14   : > { %v222_v46 = vrot.slane %v212_v36, %v974_v26  ;;  %v244_v47 = vrot.slane %v234_v37, %v980_v29  ;;  %v248_v48 = vrot.slane %v238_v38, %v980_v29  ;;  %v270_v49 = vrot.slane %v260_v41, %v984_v31  ;;  %v1065_v38 = vld [vmem:[%s1194_s1] sm:$0xff] }
  0x15   : > { %846 = vset.pattern.permute.xlu1 %v879_v7  ;;  %848 = vset.pattern.permute.xlu0 %v880_v8  ;;  %v274_v50 = vrot.slane %v264_v42, %v984_v31  ;;  %v1060_v37 = vand.u32 127, %v181_v22 }
  0x16   : > { %323 = vperm.xlu1 %846, %v936_v0   ;;  %372 = vperm.xlu0 %848, %v936_v0  }
  0x17   : > { %vm295_vm0 = vcmp.lt.s32.totalorder %v1060_v37, 17  ;;  %vm342_vm1 = vcmp.lt.s32.totalorder %v1060_v37, 16  ;;  %vm391_vm2 = vcmp.lt.s32.totalorder %v1060_v37, 15  ;;  %vm440_vm3 = vcmp.lt.s32.totalorder %v1060_v37, 1 }
  0x18   : > { %vm521_vm4 = vcmp.lt.s32.totalorder %v1060_v37, 127  ;;  %vm570_vm5 = vcmp.lt.s32.totalorder %v1060_v37, 113  ;;  %vm619_vm6 = vcmp.lt.s32.totalorder %v1060_v37, 112  ;;  %vm668_vm7 = vcmp.lt.s32.totalorder %v1060_v37, 111 }
  0x1a   : > { %847 = vset.pattern.permute.xlu1 %v881_v9  ;;  %851 = vset.pattern.permute.xlu0 %v882_v10 }
  0x1b   : > { %356 = vperm.xlu1 %847, %v936_v0   ;;  %454 = vperm.xlu0 %851, %v936_v0  }
  0x1f   : > { %849 = vset.pattern.permute.xlu1 %v883_v11  ;;  %852 = vset.pattern.permute.xlu0 %v884_v12  ;;  %v899_v11 = vmov 20   ;;  %v902_v12 = vmov 23  }
  0x20   : > { %405 = vperm.xlu1 %849, %v936_v0   ;;  %470 = vperm.xlu0 %852, %v936_v0  }
  0x24   : > { %850 = vset.pattern.permute.xlu1 %v885_v13  ;;  %855 = vset.pattern.permute.xlu0 %v886_v14  ;;  %v904_v13 = vmov 22  }
  0x25   : > { %421 = vperm.xlu1 %850, %v936_v0   ;;  %535 = vperm.xlu0 %855, %v936_v0  }
  0x29   : > { %853 = vset.pattern.permute.xlu1 %v887_v15  ;;  %856 = vset.pattern.permute.xlu0 %v888_v16 }
  0x2a   : > { %486 = vperm.xlu1 %853, %v936_v0   ;;  %551 = vperm.xlu0 %856, %v936_v0  }
  0x2e   : > { %854 = vset.pattern.permute.xlu1 %v889_v17  ;;  %859 = vset.pattern.permute.xlu0 %v890_v18 }
  0x2f   : > { %502 = vperm.xlu1 %854, %v936_v0  }
  0x33   : > { %857 = vset.pattern.permute.xlu1 %v891_v19 }
  0x34   : > { %584 = vperm.xlu1 %857, %v936_v0  }
  0x38   : > { %858 = vset.pattern.permute.xlu1 %v892_v20 }
  0x39   : > { %600 = vperm.xlu1 %858, %v936_v0  }
  0x3d   : > { %861 = vset.pattern.permute.xlu1 %v893_v21 }
  0x86   : > { %v178_v39 = vpop.permute.xlu0 %177  ;;  %v229_v40 = vpop.permute.xlu1 %228 }
  0x87   : > { %v199_v53 = vmul.f32 %v194_v43, %v178_v39  ;;  %v200_v54 = vmul.f32 %v198_v44, %v178_v39  ;;  %v249_v57 = vmul.f32 %v244_v47, %v229_v40  ;;  %v250_v58 = vmul.f32 %v248_v48, %v229_v40  ;;  %v1070_v39 = vld [vmem:[%s1194_s1 + $0x8] sm:$0xff] }
  0x88   : > { %v301_v40 = vrot.slane %v1065_v38, %v970_v24  ;;  %v305_v41 = vrot.slane %v1070_v39, %v970_v24  ;;  %v348_v47 = vrot.slane %v1065_v38, %v974_v26  ;;  %v352_v48 = vrot.slane %v1070_v39, %v974_v26 }
  0x8b   : > { %v203_v51 = vpop.permute.xlu0 %202  ;;  %v255_v52 = vpop.permute.xlu1 %254 }
  0x8c   : > { %v223_v55 = vmul.f32 %v218_v45, %v203_v51  ;;  %v224_v56 = vmul.f32 %v222_v46, %v203_v51  ;;  %v275_v61 = vmul.f32 %v270_v49, %v255_v52  ;;  %v276_v62 = vmul.f32 %v274_v50, %v255_v52 }
  0x8e   : > { %v225_v59 = vadd.f32 %v223_v55, %v199_v53  ;;  %v226_v60 = vadd.f32 %v224_v56, %v200_v54 }
  0x90   : > { %v251_v63 = vadd.f32 %v249_v57, %v225_v59  ;;  %v252_v1 = vadd.f32 %v250_v58, %v226_v60  ;;  %v281_v2 = vpop.permute.xlu1 %280  ;;  %v310_v16 = vpop.permute.xlu0 %309  ;;  %v397_v60 = vrot.slane %v1065_v38, %v980_v29 }
  0x92   : > { %v277_v3 = vadd.f32 %v275_v61, %v251_v63  ;;  %v278_v4 = vadd.f32 %v276_v62, %v252_v1  ;;  %v401_v61 = vrot.slane %v1070_v39, %v980_v29  ;;  %v446_v29 = vrot.slane %v1065_v38, %v984_v31 }
  0x94   : > { %v283_v5 = vadd.f32 %v281_v2, %v277_v3  ;;  %v284_v6 = vadd.f32 %v281_v2, %v278_v4 }
  0x95   : > { %v324_v14 = vpop.permute.xlu1 %323  ;;  %v1039_v18 = vpop.permute.xlu0 %372 }
  0x96   : > { %v285_v7 = vmul.f32 0.01, %v283_v5  ;;  %v286_v8 = vmul.f32 0.01, %v284_v6 }
  0x98   : > { %v1012_v9 = vmax.f32 %v283_v5, %v285_v7  ;;  %v1014_v10 = vmax.f32 %v284_v6, %v286_v8 }
  0x9a   : > { %291 = vrot.lane.b32.xlu0 %v1014_v10, %s894_s20  ;;  %289 = vrot.lane.b32.xlu1 %v1012_v9, %s894_s20  ;;  %v357_v15 = vpop.permute.xlu1 %356  ;;  %v1043_v20 = vpop.permute.xlu0 %454 }
  0x9e   : > { %338 = vrot.lane.b32.xlu0 %v1012_v9, %s895_s21  ;;  %340 = vrot.lane.b32.xlu1 %v1014_v10, %s895_s21 }
  0x9f   : > { %v1037_v17 = vpop.permute.xlu1 %405  ;;  %v1047_v23 = vpop.permute.xlu0 %470 }
  0xa2   : > { %389 = vrot.lane.b32.xlu0 %v1014_v10, %s896_s22  ;;  %387 = vrot.lane.b32.xlu1 %v1012_v9, %s896_s22 }
  0xa4   : > { %v1041_v19 = vpop.permute.xlu1 %421 }
  0xa6   : > { %633 = vperm.xlu0 %859, %v936_v0   ;;  %436 = vrot.lane.b32.xlu1 %v1012_v9, %s897_s23 }
  0xa9   : > { %v1045_v21 = vpop.permute.xlu1 %486 }
  0xaa   : > { %568 = vrot.lane.b32.xlu0 %v1014_v10, %s898_s24  ;;  %438 = vrot.lane.b32.xlu1 %v1014_v10, %s897_s23 }
  0xab   : > { %860 = vset.pattern.permute.xlu0 %v899_v11 }
  0xae   : > { %649 = vperm.xlu0 %860, %v936_v0   ;;  %517 = vrot.lane.b32.xlu1 %v1012_v9, %s900_s25  ;;  %v1049_v33 = vpop.permute.xlu1 %502 }
  0xb2   : > { %666 = vrot.lane.b32.xlu0 %v1014_v10, %s901_s26  ;;  %519 = vrot.lane.b32.xlu1 %v1014_v10, %s900_s25 }
  0xb3   : > { %863 = vset.pattern.permute.xlu0 %v902_v12  ;;  %v1051_v34 = vpop.permute.xlu1 %584 }
  0xb6   : > { %566 = vrot.lane.b32.xlu1 %v1012_v9, %s898_s24  ;;  %714 = vperm.xlu0 %863, %v936_v0  }
  0xb8   : > { %v1055_v35 = vpop.permute.xlu1 %600 }
  0xba   : > { %682 = vperm.xlu1 %861, %v936_v0  }
  0xbe   : > { %615 = vrot.lane.b32.xlu1 %v1012_v9, %s903_s27 }
  0xbf   : > { %862 = vset.pattern.permute.xlu1 %v904_v13 }
  0xc2   : > { %617 = vrot.lane.b32.xlu1 %v1014_v10, %s903_s27 }
  0xc6   : > { %664 = vrot.lane.b32.xlu1 %v1012_v9, %s901_s26 }
  0xca   : > { %698 = vperm.xlu1 %862, %v936_v0   ;;  %v1053_v0 = vpop.permute.xlu0 %535 }
  0xce   : > { %v1057_v36 = vpop.permute.xlu0 %551 }
 0x10c   : > { %v292_v22 = vpop.permute.xlu0 %291  ;;  %v290_v42 = vpop.permute.xlu1 %289 }
 0x10d   : > { %v296_v43 = vsel %vm295_vm0, %v290_v42, %v292_v22  ;;  %v297_v44 = vsel %vm295_vm0, %v292_v22, %v290_v42 }
 0x10e   : > { %v306_v45 = vmul.f32 %v301_v40, %v297_v44  ;;  %v307_v46 = vmul.f32 %v305_v41, %v296_v43 }
 0x110   : > { %v339_v49 = vpop.permute.xlu0 %338  ;;  %v341_v50 = vpop.permute.xlu1 %340  ;;  %v315_v51 = vrot.slane %v306_v45, %v970_v24  ;;  %v319_v52 = vrot.slane %v307_v46, %v970_v24  ;;  %v329_v55 = vrot.slane %v306_v45, %v974_v26  ;;  %v333_v56 = vrot.slane %v307_v46, %v974_v26 }
 0x111   : > { %v343_v53 = vsel %vm342_vm1, %v339_v49, %v341_v50  ;;  %v344_v54 = vsel %vm342_vm1, %v341_v50, %v339_v49 }
 0x112   : > { %v353_v57 = vmul.f32 %v348_v47, %v344_v54  ;;  %v354_v58 = vmul.f32 %v352_v48, %v343_v53  ;;  %v320_v63 = vmul.f32 %v315_v51, %v310_v16  ;;  %v321_v1 = vmul.f32 %v319_v52, %v310_v16 }
 0x113   : > { %v334_v4 = vmul.f32 %v329_v55, %v324_v14  ;;  %v335_v5 = vmul.f32 %v333_v56, %v324_v14  ;;  %v450_v16 = vrot.slane %v1070_v39, %v984_v31 }
 0x114   : > { %v390_v59 = vpop.permute.xlu0 %389  ;;  %v388_v62 = vpop.permute.xlu1 %387  ;;  %v362_v2 = vrot.slane %v353_v57, %v970_v24  ;;  %v366_v3 = vrot.slane %v354_v58, %v970_v24  ;;  %v378_v42 = vrot.slane %v353_v57, %v974_v26  ;;  %v382_v14 = vrot.slane %v354_v58, %v974_v26 }
 0x115   : > { %v392_v6 = vsel %vm391_vm2, %v388_v62, %v390_v59  ;;  %v393_v7 = vsel %vm391_vm2, %v390_v59, %v388_v62  ;;  %v336_v41 = vadd.f32 %v334_v4, %v320_v63  ;;  %v337_v22 = vadd.f32 %v335_v5, %v321_v1 }
 0x116   : > { %v367_v8 = vmul.f32 %v362_v2, %v357_v15  ;;  %v368_v11 = vmul.f32 %v366_v3, %v357_v15  ;;  %v402_v12 = vmul.f32 %v397_v60, %v393_v7  ;;  %v403_v13 = vmul.f32 %v401_v61, %v392_v6 }
 0x117   : > { %v383_v49 = vmul.f32 %v378_v42, %v1039_v18  ;;  %v384_v50 = vmul.f32 %v382_v14, %v1039_v18 }
 0x118   : > { %v437_v40 = vpop.permute.xlu1 %436  ;;  %v369_v43 = vadd.f32 %v367_v8, %v336_v41  ;;  %v370_v44 = vadd.f32 %v368_v11, %v337_v22  ;;  %v411_v15 = vrot.slane %v402_v12, %v970_v24  ;;  %v415_v45 = vrot.slane %v403_v13, %v970_v24 }
 0x119   : > { %v427_v56 = vrot.slane %v402_v12, %v974_v26  ;;  %v431_v57 = vrot.slane %v403_v13, %v974_v26  ;;  %v527_v11 = vrot.slane %v1065_v38, %v972_v25  ;;  %v496_v41 = vrot.slane %v1014_v10, %v970_v24 }
 0x11a   : > { %v385_v52 = vadd.f32 %v383_v49, %v369_v43  ;;  %v386_v53 = vadd.f32 %v384_v50, %v370_v44  ;;  %v416_v54 = vmul.f32 %v411_v15, %v1037_v17  ;;  %v417_v55 = vmul.f32 %v415_v45, %v1037_v17 }
 0x11b   : > { %v432_v18 = vmul.f32 %v427_v56, %v1041_v19  ;;  %v433_v63 = vmul.f32 %v431_v57, %v1041_v19  ;;  %v531_v19 = vrot.slane %v1070_v39, %v972_v25  ;;  %v498_v44 = vmul.f32 %v496_v41, %v1045_v21 }
 0x11c   : > { %v439_v46 = vpop.permute.xlu1 %438  ;;  %v418_v61 = vadd.f32 %v416_v54, %v385_v52  ;;  %v419_v62 = vadd.f32 %v417_v55, %v386_v53  ;;  %v508_v45 = vrot.slane %v1012_v9, %v974_v26 }
 0x11d   : > { %v441_v47 = vsel %vm440_vm3, %v437_v40, %v439_v46  ;;  %v442_v48 = vsel %vm440_vm3, %v439_v46, %v437_v40  ;;  %v512_v46 = vrot.slane %v1014_v10, %v974_v26 }
 0x11e   : > { %v451_v31 = vmul.f32 %v446_v29, %v442_v48  ;;  %v452_v51 = vmul.f32 %v450_v16, %v441_v47  ;;  %v434_v17 = vadd.f32 %v432_v18, %v418_v61  ;;  %v435_v3 = vadd.f32 %v433_v63, %v419_v62 }
 0x11f   : > { %v492_v16 = vrot.slane %v1012_v9, %v970_v24  ;;  %v514_v52 = vmul.f32 %v512_v46, %v1049_v33 }
 0x120   : > { %v460_v58 = vrot.slane %v451_v31, %v970_v24  ;;  %v464_v59 = vrot.slane %v452_v51, %v970_v24  ;;  %v518_v60 = vpop.permute.xlu1 %517  ;;  %v476_v4 = vrot.slane %v451_v31, %v974_v26  ;;  %v480_v5 = vrot.slane %v452_v51, %v974_v26 }
 0x121   : > { %v497_v25 = vmul.f32 %v492_v16, %v1045_v21  ;;  %v576_v31 = vrot.slane %v1065_v38, %v976_v27  ;;  %v580_v21 = vrot.slane %v1070_v39, %v976_v27  ;;  %v513_v51 = vmul.f32 %v508_v45, %v1049_v33 }
 0x122   : > { %v465_v1 = vmul.f32 %v460_v58, %v1043_v20  ;;  %v466_v2 = vmul.f32 %v464_v59, %v1043_v20  ;;  %v481_v20 = vmul.f32 %v476_v4, %v1047_v23  ;;  %v482_v13 = vmul.f32 %v480_v5, %v1047_v23 }
 0x124   : > { %v520_v6 = vpop.permute.xlu1 %519  ;;  %v467_v7 = vadd.f32 %v465_v1, %v434_v17  ;;  %v468_v8 = vadd.f32 %v466_v2, %v435_v3  ;;  %v629_v17 = vrot.slane %v1070_v39, %v982_v30 }
 0x125   : > { %v1121_v12 = vpop.permute.xlu0 %633  ;;  %v522_v40 = vsel %vm521_vm4, %v518_v60, %v520_v6  ;;  %v523_v29 = vsel %vm521_vm4, %v520_v6, %v518_v60 }
 0x126   : > { %v483_v22 = vadd.f32 %v481_v20, %v467_v7  ;;  %v484_v42 = vadd.f32 %v482_v13, %v468_v8  ;;  %v532_v14 = vmul.f32 %v527_v11, %v522_v40  ;;  %v533_v43 = vmul.f32 %v531_v19, %v523_v29 }
 0x128   : > { %v567_v15 = vpop.permute.xlu1 %566  ;;  %v499_v47 = vadd.f32 %v497_v25, %v483_v22  ;;  %v500_v48 = vadd.f32 %v498_v44, %v484_v42  ;;  %v541_v49 = vrot.slane %v532_v14, %v970_v24  ;;  %v545_v50 = vrot.slane %v533_v43, %v970_v24 }
 0x129   : > { %v569_v23 = vpop.permute.xlu0 %568  ;;  %v557_v59 = vrot.slane %v532_v14, %v974_v26  ;;  %v561_v60 = vrot.slane %v533_v43, %v974_v26  ;;  %v678_v22 = vrot.slane %v1070_v39, %v986_v32 }
 0x12a   : > { %v571_v9 = vsel %vm570_vm5, %v567_v15, %v569_v23  ;;  %v572_v53 = vsel %vm570_vm5, %v569_v23, %v567_v15  ;;  %v516_v54 = vadd.f32 %v514_v52, %v500_v48  ;;  %v515_v10 = vadd.f32 %v513_v51, %v499_v47 }
 0x12b   : > { %v546_v55 = vmul.f32 %v541_v49, %v1053_v0  ;;  %v547_v56 = vmul.f32 %v545_v50, %v1053_v0  ;;  %v581_v57 = vmul.f32 %v576_v31, %v571_v9  ;;  %v582_v58 = vmul.f32 %v580_v21, %v572_v53 }
 0x12c   : > { %v562_v63 = vmul.f32 %v557_v59, %v1057_v36  ;;  %v563_v1 = vmul.f32 %v561_v60, %v1057_v36  ;;  %v625_v0 = vrot.slane %v1065_v38, %v982_v30 }
 0x12d   : > { %v548_v27 = vadd.f32 %v546_v55, %v515_v10  ;;  %v549_v62 = vadd.f32 %v547_v56, %v516_v54  ;;  %v590_v18 = vrot.slane %v581_v57, %v970_v24  ;;  %v594_v33 = vrot.slane %v582_v58, %v970_v24  ;;  %v650_v7 = vpop.permute.xlu0 %649 }
 0x12e   : > { %v606_v8 = vrot.slane %v581_v57, %v974_v26  ;;  %v610_v36 = vrot.slane %v582_v58, %v974_v26 }
 0x12f   : > { %v564_v3 = vadd.f32 %v562_v63, %v548_v27  ;;  %v565_v4 = vadd.f32 %v563_v1, %v549_v62  ;;  %v595_v5 = vmul.f32 %v590_v18, %v1051_v34  ;;  %v596_v6 = vmul.f32 %v594_v33, %v1051_v34 }
 0x130   : > { %v611_v16 = vmul.f32 %v606_v8, %v1055_v35  ;;  %v612_v41 = vmul.f32 %v610_v36, %v1055_v35  ;;  %v674_v34 = vrot.slane %v1065_v38, %v986_v32 }
 0x131   : > { %v597_v13 = vadd.f32 %v595_v5, %v564_v3  ;;  %v598_v40 = vadd.f32 %v596_v6, %v565_v4  ;;  %v667_v42 = vpop.permute.xlu0 %666 }
 0x133   : > { %v613_v38 = vadd.f32 %v611_v16, %v597_v13  ;;  %v614_v45 = vadd.f32 %v612_v41, %v598_v40 }
 0x135   : > { %v715_v59 = vpop.permute.xlu0 %714 }
 0x139   : > { %v683_v61 = vpop.permute.xlu1 %682 }
 0x13d   : > { %v616_v2 = vpop.permute.xlu1 %615 }
 0x141   : > { %v618_v11 = vpop.permute.xlu1 %617 }
 0x142   : > { %v620_v19 = vsel %vm619_vm6, %v616_v2, %v618_v11  ;;  %v621_v20 = vsel %vm619_vm6, %v618_v11, %v616_v2 }
 0x143   : > { %v630_v29 = vmul.f32 %v625_v0, %v620_v19  ;;  %v631_v30 = vmul.f32 %v629_v17, %v621_v20 }
 0x145   : > { %v639_v14 = vrot.slane %v630_v29, %v970_v24  ;;  %v643_v43 = vrot.slane %v631_v30, %v970_v24  ;;  %v655_v25 = vrot.slane %v630_v29, %v974_v26  ;;  %v659_v44 = vrot.slane %v631_v30, %v974_v26  ;;  %v665_v15 = vpop.permute.xlu1 %664 }
 0x146   : > { %v669_v23 = vsel %vm668_vm7, %v665_v15, %v667_v42  ;;  %v670_v35 = vsel %vm668_vm7, %v667_v42, %v665_v15 }
 0x147   : > { %v644_v32 = vmul.f32 %v639_v14, %v1121_v12  ;;  %v645_v39 = vmul.f32 %v643_v43, %v1121_v12  ;;  %v679_v46 = vmul.f32 %v674_v34, %v669_v23  ;;  %v680_v47 = vmul.f32 %v678_v22, %v670_v35 }
 0x148   : > { %v660_v48 = vmul.f32 %v655_v25, %v650_v7  ;;  %v661_v49 = vmul.f32 %v659_v44, %v650_v7 }
 0x149   : > { %v646_v50 = vadd.f32 %v644_v32, %v613_v38  ;;  %v647_v31 = vadd.f32 %v645_v39, %v614_v45  ;;  %v688_v21 = vrot.slane %v679_v46, %v970_v24  ;;  %v692_v51 = vrot.slane %v680_v47, %v970_v24  ;;  %v699_v9 = vpop.permute.xlu1 %698 }
 0x14a   : > { %v704_v52 = vrot.slane %v679_v46, %v974_v26  ;;  %v708_v37 = vrot.slane %v680_v47, %v974_v26  ;;  %v723_v24 = vcombine.high %v978_v28, %v978_v28 }
 0x14b   : > { %v662_v53 = vadd.f32 %v660_v48, %v646_v50  ;;  %v663_v54 = vadd.f32 %v661_v49, %v647_v31  ;;  %v693_v10 = vmul.f32 %v688_v21, %v683_v61  ;;  %v694_v55 = vmul.f32 %v692_v51, %v683_v61 }
 0x14c   : > { %v709_v12 = vmul.f32 %v704_v52, %v699_v9  ;;  %v710_v56 = vmul.f32 %v708_v37, %v699_v9 }
 0x14d   : > { %v695_v57 = vadd.f32 %v693_v10, %v662_v53  ;;  %v696_v58 = vadd.f32 %v694_v55, %v663_v54 }
 0x14f   : > { %v711_v60 = vadd.f32 %v709_v12, %v695_v57  ;;  %v712_v27 = vadd.f32 %v710_v56, %v696_v58 }
 0x151   : > { %v717_v62 = vadd.f32 %v715_v59, %v711_v60  ;;  %v718_v18 = vadd.f32 %v715_v59, %v712_v27 }
 0x153   : > { %v719_v33 = vmul.f32 0.01, %v717_v62  ;;  %v720_v26 = vmul.f32 0.01, %v718_v18 }
 0x155   : > { %v721_v63 = vmax.f32 %v717_v62, %v719_v33  ;;  %v722_v1 = vmax.f32 %v718_v18, %v720_v26 }
 0x157   : > { %v725_v2 = vadd.f32 %v721_v63, %v978_v28  ;;  %v726_v61 = vadd.f32 %v723_v24, %v722_v1 }
 0x159   : > { %v729_v0 = vcombine.low %v725_v2, %v726_v61 }
 0x15b   : > { %731 = vst [vmem:[%s170_s7] sm:$0xff] %v729_v0 }
 0x15c PF: > { %s13_s12 = sadd.s32 1, %s871_s12  }
 0x15d   : > { %p10_p4 = scmp.ge.s32.totalorder %s13_s12, 4  }
 0x15f   :  { %12 = sbr.rel (!%p10_p4) target bundleno = 1 (0x1), region = 62 }

</bundles_post_ra>
